<compile_context>
chip_gen: v5e
topology: v5e:2x2
jax: 0.10.0
libtpu: 0.0.40
codegen_flags: <defaults>
</compile_context>

<pallas_src>
import functools

import jax
import jax.numpy as jnp
from jax.experimental import pallas as pl
from jax.experimental.pallas import tpu as pltpu  # noqa: F401  (memory spaces available if needed)

EPS = 1e-5


def _round_up(x, m):
    return ((x + m - 1) // m) * m


def _pad2(a, rows, cols):
    r, c = a.shape
    return jnp.pad(a, ((0, rows - r), (0, cols - c)))


def simple_nn_kernel(n_hidden, first_size_p, x_ref, w_ref, gbb_ref, o_ref):
    """Fused Linear -> BN(train) -> ReLU blocks + final Linear.

    x_ref:   (B, first_size_p)   f32 raw input (all scalar scales folded into weights)
    w_ref:   (n_hidden+1, F, F)  f32, pre-transposed (in, out), zero-padded;
                                 layer 0 has the /1000 fold, last layer the *1000 fold.
    gbb_ref: (2*n_hidden+1, F)   rows 2k = gamma_k, 2k+1 = beta_k, last row = b_end*1000
    o_ref:   (B, F)              lane-dense (F = multiple of 128) output slab
    """
    h = x_ref[...]                                   # (B, first_size_p)
    inv_n = 1.0 / h.shape[0]

    # Python unroll is fine for a handful of layers; with many identically-shaped
    # layers switch to lax.fori_loop(..., unroll=True) over w_ref[k] slices.
    for k in range(n_hidden):
        w = w_ref[k]                                 # (F, F) single VMEM load
        if k == 0:
            w = w[:first_size_p, :]                  # static, sublane-aligned slice

        # Hidden Linear; bias dropped (cancels exactly under training-mode BN).
        h = jnp.dot(h, w, preferred_element_type=jnp.float32)

        gb = gbb_ref[2 * k:2 * k + 2, :]             # (2, F)
        g = gb[0:1, :]
        be = gb[1:2, :]

        # BatchNorm1d (training mode, biased variance; two-pass for stability),
        # fused into one per-feature scale/shift + ReLU pass.
        mean = jnp.sum(h, axis=0, keepdims=True) * inv_n
        c = h - mean
        var = jnp.sum(c * c, axis=0, keepdims=True) * inv_n
        scale = g * jax.lax.rsqrt(var + EPS)         # EUP rsqrt (free slot)
        shift = be - mean * scale
        h = jnp.maximum(h * scale + shift, 0.0)

    w_end = w_ref[n_hidden]                          # (F, F), *1000 already folded
    b_end = gbb_ref[2 * n_hidden:2 * n_hidden + 1, :]  # (1, F), *1000 already folded
    o_ref[...] = jnp.dot(h, w_end, preferred_element_type=jnp.float32) + b_end


def pack_simple_nn_params(hidden_params, w_end, b_end, first_size):
    """One-time parameter prep (tiny weight tensors only, no activation work).

    hidden_params: list of (w, b, gamma, beta) with w pre-transposed to (in, out)
    and b/gamma/beta shaped (1, out).  Hidden biases are accepted (mirrors the
    PyTorch parameter set) but discarded: they cancel exactly under
    training-mode BatchNorm.  Folds x/1000 into W0 and the *1000 output scale
    into (w_end, b_end), pads every feature dim to a lane-dense multiple of
    128, and stacks everything into just two kernel operands.
    """
    n_hidden = len(hidden_params)
    mid_sizes = [w.shape[1] for (w, _, _, _) in hidden_params]
    end_size = w_end.shape[1]
    feat = _round_up(max(mid_sizes + [end_size, first_size]), 128)

    w_list, gb_rows = [], []
    for k, (w, _b, g, be) in enumerate(hidden_params):
        w = jnp.asarray(w, jnp.float32)
        if k == 0:
            w = w / 1000.0                            # exact fold of the input scale
        w_list.append(_pad2(w, feat, feat))
        gb_rows.append(_pad2(jnp.asarray(g, jnp.float32), 1, feat))
        gb_rows.append(_pad2(jnp.asarray(be, jnp.float32), 1, feat))
    w_list.append(_pad2(jnp.asarray(w_end, jnp.float32) * 1000.0, feat, feat))
    gb_rows.append(_pad2(jnp.asarray(b_end, jnp.float32) * 1000.0, 1, feat))

    w_stack = jnp.stack(w_list, axis=0)               # (n_hidden+1, feat, feat)
    gbb = jnp.concatenate(gb_rows, axis=0)            # (2*n_hidden+1, feat)
    return w_stack, gbb, n_hidden, first_size, end_size, feat


def simple_nn_forward(x, packed):
    """x: (B, first_size) f32.  `packed` from pack_simple_nn_params."""
    w_stack, gbb, n_hidden, first_size, end_size, feat = packed
    batch = x.shape[0]
    fs_p = _round_up(first_size, 8)
    x = jnp.asarray(x, jnp.float32)
    if fs_p != first_size:                            # no-op at first_size=16
        x = jnp.pad(x, ((0, 0), (0, fs_p - first_size)))

    kernel = functools.partial(simple_nn_kernel, n_hidden, fs_p)
    out = pl.pallas_call(
        kernel,
        out_shape=jax.ShapeDtypeStruct((batch, feat), jnp.float32),
        # Tiny, fully VMEM-resident problem: grid-less call with default
        # full-array blocks keeps all 3 operands resident for one fused pass.
        # TODO(synk): if batch/hidden sizes scale up, add a batch grid axis
        # with dimension_semantics=("parallel",) (v7x 2-TC) and re-derive the
        # VMEM budget (64 MiB on v7x); BN stats would then need a cross-core
        # reduction.
    )(x, w_stack, gbb)
    return out[:, :end_size]


def reference_forward(x, hidden_params, w_end, b_end):
    # Faithful PyTorch semantics: bias included, /1000 and *1000 explicit,
    # training-mode BN with two-pass biased variance.
    h = x / 1000.0
    for (w, b, g, be) in hidden_params:
        h = h @ w + b
        mean = jnp.mean(h, axis=0, keepdims=True)
        var = jnp.mean((h - mean) ** 2, axis=0, keepdims=True)
        h = (h - mean) * jax.lax.rsqrt(var + EPS) * g + be
        h = jnp.maximum(h, 0.0)
    return 1000.0 * (h @ w_end + b_end)


if __name__ == "__main__":
    key = jax.random.PRNGKey(0)

    batch = 8           # multiple of 8 -> full f32 sublane groups
    first_size = 16
    mid_sizes = [32, 32]
    end_size = 8

    # Deterministic parameter init (synthetic; mimics nn.Linear shapes).
    sizes = [first_size] + mid_sizes
    hidden_params = []
    for k in range(len(mid_sizes)):
        key, k1, k2, k3, k4 = jax.random.split(key, 5)
        fan_in, fan_out = sizes[k], sizes[k + 1]
        # PyTorch Linear weight is (out, in); we build it pre-transposed (in, out).
        w = jax.random.normal(k1, (fan_in, fan_out), jnp.float32) * (1.0 / jnp.sqrt(fan_in))
        b = jax.random.normal(k2, (1, fan_out), jnp.float32) * 0.1
        gamma = 1.0 + 0.1 * jax.random.normal(k3, (1, fan_out), jnp.float32)
        beta = 0.1 * jax.random.normal(k4, (1, fan_out), jnp.float32)
        hidden_params.append((w, b, gamma, beta))

    key, k1, k2, kx = jax.random.split(key, 4)
    w_end = jax.random.normal(k1, (mid_sizes[-1], end_size), jnp.float32) * (
        1.0 / jnp.sqrt(mid_sizes[-1])
    )
    b_end = jax.random.normal(k2, (1, end_size), jnp.float32) * 0.1

    x = jax.random.normal(kx, (batch, first_size), jnp.float32) * 100.0

    packed = pack_simple_nn_params(hidden_params, w_end, b_end, first_size)
    out = jax.block_until_ready(simple_nn_forward(x, packed))

    ref = reference_forward(x, hidden_params, w_end, b_end)
    assert out.shape == (batch, end_size)
    assert jnp.allclose(out, ref, rtol=1e-4, atol=1e-3), "mismatch vs reference"

    print("KERNEL_OK")
</pallas_src>

<mosaic_0001>
module attributes {stable_mosaic.version = 11 : i64} {
  func.func @simple_nn_kernel(%arg0: memref<8x16xf32, #tpu.memory_space<vmem>>, %arg1: memref<3x128x128xf32, #tpu.memory_space<vmem>>, %arg2: memref<5x128xf32, #tpu.memory_space<vmem>>, %arg3: memref<8x128xf32, #tpu.memory_space<vmem>>) attributes {dimension_semantics = [], scalar_prefetch = 0 : i64, scratch_operands = 0 : i64, tpu.core_type = #tpu.core_type<tc>} {
    %c0 = arith.constant 0 : index
    %c0_0 = arith.constant 0 : index
    %0 = vector.load %arg0[%c0, %c0_0] : memref<8x16xf32, #tpu.memory_space<vmem>>, vector<8x16xf32>
    %c0_1 = arith.constant 0 : index
    %c0_2 = arith.constant 0 : index
    %c0_3 = arith.constant 0 : index
    %1 = vector.load %arg1[%c0_1, %c0_2, %c0_3] : memref<3x128x128xf32, #tpu.memory_space<vmem>>, vector<1x128x128xf32>
    %2 = vector.shape_cast %1 : vector<1x128x128xf32> to vector<128x128xf32>
    %3 = vector.extract_strided_slice %2 {offsets = [0, 0], sizes = [16, 128], strides = [1, 1]} : vector<128x128xf32> to vector<16x128xf32>
    %cst = arith.constant dense<0.000000e+00> : vector<8x128xf32>
    %4 = tpu.matmul %0, %3, %cst {dimension_numbers = #tpu.dot_dimension_numbers<[1], [0], [0], [1], [0, 0, 1, 1], [], []>} : vector<8x16xf32>, vector<16x128xf32>, vector<8x128xf32> -> vector<8x128xf32>
    %c0_4 = arith.constant 0 : index
    %c0_5 = arith.constant 0 : index
    %5 = vector.load %arg2[%c0_4, %c0_5] : memref<5x128xf32, #tpu.memory_space<vmem>>, vector<2x128xf32>
    %6 = vector.extract_strided_slice %5 {offsets = [0, 0], sizes = [1, 128], strides = [1, 1]} : vector<2x128xf32> to vector<1x128xf32>
    %7 = vector.extract_strided_slice %5 {offsets = [1, 0], sizes = [1, 128], strides = [1, 1]} : vector<2x128xf32> to vector<1x128xf32>
    %cst_6 = arith.constant dense<0.000000e+00> : vector<128xf32>
    %8 = vector.multi_reduction <add>, %4, %cst_6 [0] : vector<8x128xf32> to vector<128xf32>
    %9 = vector.shape_cast %8 : vector<128xf32> to vector<1x128xf32>
    %cst_7 = arith.constant 1.250000e-01 : f32
    %10 = vector.broadcast %cst_7 : f32 to vector<1x128xf32>
    %11 = arith.mulf %9, %10 : vector<1x128xf32>
    %12 = vector.broadcast %11 : vector<1x128xf32> to vector<8x128xf32>
    %13 = arith.subf %4, %12 : vector<8x128xf32>
    %14 = arith.mulf %13, %13 : vector<8x128xf32>
    %cst_8 = arith.constant dense<0.000000e+00> : vector<128xf32>
    %15 = vector.multi_reduction <add>, %14, %cst_8 [0] : vector<8x128xf32> to vector<128xf32>
    %16 = vector.shape_cast %15 : vector<128xf32> to vector<1x128xf32>
    %cst_9 = arith.constant 1.250000e-01 : f32
    %17 = vector.broadcast %cst_9 : f32 to vector<1x128xf32>
    %18 = arith.mulf %16, %17 : vector<1x128xf32>
    %cst_10 = arith.constant 9.99999974E-6 : f32
    %19 = vector.broadcast %cst_10 : f32 to vector<1x128xf32>
    %20 = arith.addf %18, %19 : vector<1x128xf32>
    %21 = math.rsqrt %20 : vector<1x128xf32>
    %22 = arith.mulf %6, %21 : vector<1x128xf32>
    %23 = arith.mulf %11, %22 : vector<1x128xf32>
    %24 = arith.subf %7, %23 : vector<1x128xf32>
    %25 = vector.broadcast %22 : vector<1x128xf32> to vector<8x128xf32>
    %26 = arith.mulf %4, %25 : vector<8x128xf32>
    %27 = vector.broadcast %24 : vector<1x128xf32> to vector<8x128xf32>
    %28 = arith.addf %26, %27 : vector<8x128xf32>
    %cst_11 = arith.constant 0.000000e+00 : f32
    %29 = vector.broadcast %cst_11 : f32 to vector<8x128xf32>
    %30 = arith.maximumf %28, %29 : vector<8x128xf32>
    %c1 = arith.constant 1 : index
    %c0_12 = arith.constant 0 : index
    %c0_13 = arith.constant 0 : index
    %31 = vector.load %arg1[%c1, %c0_12, %c0_13] : memref<3x128x128xf32, #tpu.memory_space<vmem>>, vector<1x128x128xf32>
    %32 = vector.shape_cast %31 : vector<1x128x128xf32> to vector<128x128xf32>
    %cst_14 = arith.constant dense<0.000000e+00> : vector<8x128xf32>
    %33 = tpu.matmul %30, %32, %cst_14 {dimension_numbers = #tpu.dot_dimension_numbers<[1], [0], [0], [1], [0, 0, 1, 1], [], []>} : vector<8x128xf32>, vector<128x128xf32>, vector<8x128xf32> -> vector<8x128xf32>
    %c2 = arith.constant 2 : index
    %c0_15 = arith.constant 0 : index
    %34 = vector.load %arg2[%c2, %c0_15] : memref<5x128xf32, #tpu.memory_space<vmem>>, vector<2x128xf32>
    %35 = vector.extract_strided_slice %34 {offsets = [0, 0], sizes = [1, 128], strides = [1, 1]} : vector<2x128xf32> to vector<1x128xf32>
    %36 = vector.extract_strided_slice %34 {offsets = [1, 0], sizes = [1, 128], strides = [1, 1]} : vector<2x128xf32> to vector<1x128xf32>
    %cst_16 = arith.constant dense<0.000000e+00> : vector<128xf32>
    %37 = vector.multi_reduction <add>, %33, %cst_16 [0] : vector<8x128xf32> to vector<128xf32>
    %38 = vector.shape_cast %37 : vector<128xf32> to vector<1x128xf32>
    %cst_17 = arith.constant 1.250000e-01 : f32
    %39 = vector.broadcast %cst_17 : f32 to vector<1x128xf32>
    %40 = arith.mulf %38, %39 : vector<1x128xf32>
    %41 = vector.broadcast %40 : vector<1x128xf32> to vector<8x128xf32>
    %42 = arith.subf %33, %41 : vector<8x128xf32>
    %43 = arith.mulf %42, %42 : vector<8x128xf32>
    %cst_18 = arith.constant dense<0.000000e+00> : vector<128xf32>
    %44 = vector.multi_reduction <add>, %43, %cst_18 [0] : vector<8x128xf32> to vector<128xf32>
    %45 = vector.shape_cast %44 : vector<128xf32> to vector<1x128xf32>
    %cst_19 = arith.constant 1.250000e-01 : f32
    %46 = vector.broadcast %cst_19 : f32 to vector<1x128xf32>
    %47 = arith.mulf %45, %46 : vector<1x128xf32>
    %cst_20 = arith.constant 9.99999974E-6 : f32
    %48 = vector.broadcast %cst_20 : f32 to vector<1x128xf32>
    %49 = arith.addf %47, %48 : vector<1x128xf32>
    %50 = math.rsqrt %49 : vector<1x128xf32>
    %51 = arith.mulf %35, %50 : vector<1x128xf32>
    %52 = arith.mulf %40, %51 : vector<1x128xf32>
    %53 = arith.subf %36, %52 : vector<1x128xf32>
    %54 = vector.broadcast %51 : vector<1x128xf32> to vector<8x128xf32>
    %55 = arith.mulf %33, %54 : vector<8x128xf32>
    %56 = vector.broadcast %53 : vector<1x128xf32> to vector<8x128xf32>
    %57 = arith.addf %55, %56 : vector<8x128xf32>
    %cst_21 = arith.constant 0.000000e+00 : f32
    %58 = vector.broadcast %cst_21 : f32 to vector<8x128xf32>
    %59 = arith.maximumf %57, %58 : vector<8x128xf32>
    %c2_22 = arith.constant 2 : index
    %c0_23 = arith.constant 0 : index
    %c0_24 = arith.constant 0 : index
    %60 = vector.load %arg1[%c2_22, %c0_23, %c0_24] : memref<3x128x128xf32, #tpu.memory_space<vmem>>, vector<1x128x128xf32>
    %61 = vector.shape_cast %60 : vector<1x128x128xf32> to vector<128x128xf32>
    %c4 = arith.constant 4 : index
    %c0_25 = arith.constant 0 : index
    %62 = vector.load %arg2[%c4, %c0_25] : memref<5x128xf32, #tpu.memory_space<vmem>>, vector<1x128xf32>
    %cst_26 = arith.constant dense<0.000000e+00> : vector<8x128xf32>
    %63 = tpu.matmul %59, %61, %cst_26 {dimension_numbers = #tpu.dot_dimension_numbers<[1], [0], [0], [1], [0, 0, 1, 1], [], []>} : vector<8x128xf32>, vector<128x128xf32>, vector<8x128xf32> -> vector<8x128xf32>
    %64 = vector.broadcast %62 : vector<1x128xf32> to vector<8x128xf32>
    %65 = arith.addf %63, %64 : vector<8x128xf32>
    %c0_27 = arith.constant 0 : index
    %c0_28 = arith.constant 0 : index
    %66 = vector.load %arg3[%c0_27, %c0_28] : memref<8x128xf32, #tpu.memory_space<vmem>>, vector<8x128xf32>
    tpu.vector_store %arg3[%c0_27, %c0_28], %65 {strides = array<i32>} : memref<8x128xf32, #tpu.memory_space<vmem>>, vector<8x128xf32>,
    return
  }
}

</mosaic_0001>

<bundles_post_ra>
// kernel: tpu_custom_call.1
= control target key start
LH: loop header
LB: loop body
LE: loop exit
PB: predicated region body
PF: predicated region fallthrough
CT: control target
= control target key end

     0   :  { %8 = vsyncpa [#allocation3], 0  ;;  %s422_s0 = inlined_call_operand.hbm [shape: f32[8,16], index: 0, kind: input, shape index: {}]   ;;  %s423_s1 = inlined_call_operand.hbm [shape: f32[3,128,128], index: 1, kind: input, shape index: {}]   ;;  %s424_s2 = inlined_call_operand.hbm [shape: f32[5,128], index: 2, kind: input, shape index: {}]   ;;  %s425_s3 = inlined_call_operand.hbm [shape: f32[8,128], index: 3, kind: output, shape index: {}]  }
   0x1   :  { %9 = vsyncpa [#allocation6], 0  ;;  %s26_s14 = sshll.u32 %s423_s1, 4  ;;  %s27_s14 = int_to_ptr.hbm [resolvable:$true] %s26_s14 }
   0x2   :  { %10 = vsyncpa [#allocation4], 0  ;;  %s372_s15 = smov [#allocation5]   ;;  %s16_s19 = sshll.u32 %s422_s0, 4  ;;  %s17_s19 = int_to_ptr.hbm [resolvable:$true] %s16_s19 }
   0x3   :  { %s28_s16 = sshll.u32 %s372_s15, 4  ;;  %s373_s20 = smov 128   ;;  %s29_s16 = int_to_ptr.vmem [resolvable:$true] %s28_s16 }
   0x4   :  { %s374_s21 = smov 8   ;;  %s375_s22 = smov [#allocation2]  }
   0x5   :  { %34 = dma.hbm_to_vmem [thread:$0]  %s27_s14, 6144, %s29_s16, [#allocation6], %s373_s20, %s373_s20, %s374_s21  }
   0x6   :  { %s18_s23 = sshll.u32 %s375_s22, 4  ;;  %s40_s26 = sshll.u32 %s424_s2, 4  ;;  %s19_s23 = int_to_ptr.vmem [resolvable:$true] %s18_s23  ;;  %s41_s26 = int_to_ptr.hbm [resolvable:$true] %s40_s26 }
   0x7   :  { %21 = dma.hbm_to_vmem [thread:$0]  %s17_s19, 128, %s19_s23, [#allocation3]  }
   0x8   :  { %s376_s1 = smov [#allocation7]  }
   0x9   :  { %s42_s27 = sshll.u32 %s376_s1, 4  ;;  %s43_s27 = int_to_ptr.vmem [resolvable:$true] %s42_s27 }
   0xa   :  { %45 = dma.hbm_to_vmem [thread:$0]  %s41_s26, 128, %s43_s27, [#allocation6]  }
   0xb   :  { %366 = dma.done.wait [#allocation3], 128  }
   0xc   :  { %367 = vsyncadd [#allocation3], 4294967168 }
   0xd   :  { %368 = dma.done.wait [#allocation6], 6272  }
   0xe   :  { %369 = vsyncadd [#allocation6], 4294961024  ;;  %v60_v0 = vld [vmem:[#allocation5 + $0x8] sm:$0xff]  ;;  %v59_v1 = vld [vmem:[#allocation5] sm:$0xff]  ;;  %vm61_vm0 = vcmask 130048   ;;  %s377_s0 = smov [#allocation8]  }
   0xf   :  { %79 = vmatpush.msra.mxu0 %v60_v0  ;;  %v58_v2 = vld [vmem:[#allocation2] sm:$0xff]  ;;  %v139_v8 = vld [vmem:[#allocation5 + $0xf0] sm:$0xff]  ;;  %v138_v10 = vld [vmem:[#allocation5 + $0xe8] sm:$0xff]  ;;  %s245_s2 = sshll.u32 %s377_s0, 4  ;;  %s247_s30 = sshll.u32 %s425_s3, 4  ;;  %s246_s2 = int_to_ptr.vmem [resolvable:$true] %s245_s2  ;;  %s248_s30 = int_to_ptr.hbm [resolvable:$true] %s247_s30 }
  0x10   :  { %v140_v6 = vld [vmem:[#allocation5 + $0xf8] sm:$0xff]  ;;  %v137_v12 = vld [vmem:[#allocation5 + $0xe0] sm:$0xff]  ;;  %v135_v16 = vld [vmem:[#allocation5 + $0xd0] sm:$0xff] }
  0x11   :  { %80 = vmatpush.msra.mxu0 %v59_v1  ;;  %141 = vmatpush.msra.mxu1 %v140_v6  ;;  %v136_v14 = vld [vmem:[#allocation5 + $0xd8] sm:$0xff]  ;;  %v134_v18 = vld [vmem:[#allocation5 + $0xc8] sm:$0xff]  ;;  %v133_v20 = vld [vmem:[#allocation5 + $0xc0] sm:$0xff] }
  0x12   :  { %258 = vmatmul.msk.f32.vlgmr.msra.gmra.mxu0 %vm61_vm0, %v58_v2  ;;  %v132_v22 = vld [vmem:[#allocation5 + $0xb8] sm:$0xff]  ;;  %v131_v24 = vld [vmem:[#allocation5 + $0xb0] sm:$0xff]  ;;  %v130_v26 = vld [vmem:[#allocation5 + $0xa8] sm:$0xff] }
  0x13   :  { %142 = vmatpush.msra.mxu1 %v139_v8  ;;  %v129_v28 = vld [vmem:[#allocation5 + $0xa0] sm:$0xff]  ;;  %v128_v29 = vld [vmem:[#allocation5 + $0x98] sm:$0xff]  ;;  %v127_v31 = vld [vmem:[#allocation5 + $0x90] sm:$0xff] }
  0x14   :  { %v126_v33 = vld [vmem:[#allocation5 + $0x88] sm:$0xff]  ;;  %v125_v35 = vld [vmem:[#allocation5 + $0x80] sm:$0xff]  ;;  %v216_v57 = vld [vmem:[#allocation5 + $0x178] sm:$0xff] }
  0x15   :  { %143 = vmatpush.msra.mxu1 %v138_v10  ;;  %v85_v42 = vld [vmem:[#allocation7] sm:$0x3]  ;;  %219 = vmatpush.msra.mxu2 %v216_v57  ;;  %v215_v59 = vld [vmem:[#allocation5 + $0x170] sm:$0xff]  ;;  %v214_v61 = vld [vmem:[#allocation5 + $0x168] sm:$0xff] }
  0x16   :  { %v213_v63 = vld [vmem:[#allocation5 + $0x160] sm:$0xff]  ;;  %v212_v1 = vld [vmem:[#allocation5 + $0x158] sm:$0xff] }
  0x17   :  { %144 = vmatpush.msra.mxu1 %v137_v12  ;;  %220 = vmatpush.msra.mxu2 %v215_v59 }
  0x19   :  { %145 = vmatpush.msra.mxu1 %v136_v14  ;;  %221 = vmatpush.msra.mxu2 %v214_v61 }
  0x1b   :  { %146 = vmatpush.msra.mxu1 %v135_v16  ;;  %222 = vmatpush.msra.mxu2 %v213_v63  ;;  %v204_v16 = vld [vmem:[#allocation5 + $0x118] sm:$0xff] }
  0x1d   :  { %147 = vmatpush.msra.mxu1 %v134_v18  ;;  %223 = vmatpush.msra.mxu2 %v212_v1  ;;  %v203_v18 = vld [vmem:[#allocation5 + $0x110] sm:$0xff] }
  0x1f   :  { %148 = vmatpush.msra.mxu1 %v133_v20  ;;  %v202_v20 = vld [vmem:[#allocation5 + $0x108] sm:$0xff] }
  0x21   :  { %149 = vmatpush.msra.mxu1 %v132_v22  ;;  %v201_v22 = vld [vmem:[#allocation5 + $0x100] sm:$0xff] }
  0x23   :  { %150 = vmatpush.msra.mxu1 %v131_v24 }
  0x25   :  { %151 = vmatpush.msra.mxu1 %v130_v26 }
  0x27   :  { %152 = vmatpush.msra.mxu1 %v129_v28 }
  0x29   :  { %153 = vmatpush.msra.mxu1 %v128_v29  ;;  %v161_v29 = vld [vmem:[#allocation7 + $0x2] sm:$0x3] }
  0x2b   :  { %154 = vmatpush.msra.mxu1 %v127_v31 }
  0x2d   :  { %155 = vmatpush.msra.mxu1 %v126_v33 }
  0x2f   :  { %156 = vmatpush.msra.mxu1 %v125_v35 }
  0x8f   :  { %v407_v3 = vpop.f32.mrf.mxu0 }
  0x90   :  { %v86_v4 = vrot.slane %v407_v3, 4 }
  0x92   :  { %v87_v5 = vadd.f32 %v86_v4, %v407_v3 }
  0x94   :  { %v88_v7 = vrot.slane %v87_v5, 2 }
  0x96   :  { %v89_v9 = vadd.f32 %v88_v7, %v87_v5  ;;  %v210_v5 = vld [vmem:[#allocation5 + $0x148] sm:$0xff]  ;;  %v209_v7 = vld [vmem:[#allocation5 + $0x140] sm:$0xff] }
  0x98   :  { %v90_v11 = vrot.slane %v89_v9, 1 }
  0x9a   :  { %v91_v13 = vadd.f32 %v90_v11, %v89_v9  ;;  %v208_v9 = vld [vmem:[#allocation5 + $0x138] sm:$0xff]  ;;  %v207_v11 = vld [vmem:[#allocation5 + $0x130] sm:$0xff] }
  0x9c   :  { %v92_v15 = vmul.f32 0.125, %v91_v13  ;;  %v206_v13 = vld [vmem:[#allocation5 + $0x128] sm:$0xff] }
  0x9e   :  { %v93_v17 = vsub.f32 %v407_v3, %v92_v15 }
  0xa0   :  { %v94_v19 = vmul.f32 %v93_v17, %v93_v17 }
  0xa2   :  { %v95_v21 = vrot.slane %v94_v19, 4 }
  0xa4   :  { %v96_v23 = vadd.f32 %v95_v21, %v94_v19 }
  0xa6   :  { %v97_v25 = vrot.slane %v96_v23, 2 }
  0xa8   :  { %v98_v27 = vadd.f32 %v97_v25, %v96_v23 }
  0xaa   :  { %v99_v30 = vrot.slane %v98_v27, 1 }
  0xac   :  { %v100_v32 = vadd.f32 %v99_v30, %v98_v27 }
  0xae   :  { %v101_v34 = vmul.f32 0.125, %v100_v32 }
  0xb0   :  { %v102_v36 = vadd.f32 1e-05, %v101_v34 }
  0xb2   :  { %266 = vrsqrt.f32 %v102_v36  ;;  %vm109_vm2 = vweird.f32 %v102_v36 }
  0xb8   :  { %v267_v37 = vpop.eup %266 }
  0xb9   :  { %v104_v38 = vmul.f32 %v267_v37, %v102_v36  ;;  %vm110_vm1 = vweird.f32 %v267_v37 }
  0xba   :  { %vm111_vm3 = vmor %vm109_vm2, %vm110_vm1 }
  0xbb   :  { %v105_v39 = vmul.f32 %v267_v37, %v104_v38 }
  0xbd   :  { %v106_v40 = vmul.f32 0.5, %v105_v39 }
  0xbf   :  { %v107_v41 = vsub.f32 1.5, %v106_v40 }
  0xc1   :  { %v108_v43 = vmul.f32 %v267_v37, %v107_v41  ;;  %v265_v41 = vld [vmem:[#allocation7 + $0x4] ss:$0 sm:$0xff] }
  0xc3   :  { %v112_v44 = vsel %vm111_vm3, %v267_v37, %v108_v43 }
  0xc4   :  { %v113_v45 = vmul.f32 %v112_v44, %v85_v42 }
  0xc6   :  { %v114_v46 = vmul.f32 %v113_v45, %v92_v15  ;;  %v119_v47 = vperm.slane %v113_v45, 0  ;;  %v205_v15 = vld [vmem:[#allocation5 + $0x120] sm:$0xff] }
  0xc8   :  { %v116_v48 = vrot.slane %v114_v46, 7  ;;  %v120_v50 = vmul.f32 %v119_v47, %v407_v3  ;;  %v211_v3 = vld [vmem:[#allocation5 + $0x150] sm:$0xff] }
  0xc9   :  { %224 = vmatpush.msra.mxu2 %v211_v3 }
  0xca   :  { %v118_v49 = vsub.f32 %v85_v42, %v116_v48 }
  0xcb   :  { %225 = vmatpush.msra.mxu2 %v210_v5 }
  0xcc   :  { %v121_v51 = vperm.slane %v118_v49, 1 }
  0xcd   :  { %226 = vmatpush.msra.mxu2 %v209_v7 }
  0xce   :  { %v122_v52 = vadd.f32 %v121_v51, %v120_v50 }
  0xcf   :  { %227 = vmatpush.msra.mxu2 %v208_v9 }
  0xd0   :  { %v123_v53 = vmax.f32 %v122_v52, 0.0 }
  0xd1   :  { %228 = vmatpush.msra.mxu2 %v207_v11 }
  0xd2   :  { %157 = vmatmul.f32.vlgmr.msra.gmra.mxu1 %v123_v53 }
  0xd3   :  { %229 = vmatpush.msra.mxu2 %v206_v13 }
  0xd5   :  { %230 = vmatpush.msra.mxu2 %v205_v15 }
  0xd7   :  { %231 = vmatpush.msra.mxu2 %v204_v16 }
  0xd9   :  { %232 = vmatpush.msra.mxu2 %v203_v18 }
  0xdb   :  { %233 = vmatpush.msra.mxu2 %v202_v20 }
  0xdd   :  { %234 = vmatpush.msra.mxu2 %v201_v22 }
 0x14f   :  { %v413_v54 = vpop.f32.mrf.mxu1 }
 0x150   :  { %v162_v55 = vrot.slane %v413_v54, 4 }
 0x152   :  { %v163_v56 = vadd.f32 %v162_v55, %v413_v54 }
 0x154   :  { %v164_v58 = vrot.slane %v163_v56, 2 }
 0x156   :  { %v165_v60 = vadd.f32 %v164_v58, %v163_v56 }
 0x158   :  { %v166_v62 = vrot.slane %v165_v60, 1 }
 0x15a   :  { %v167_v0 = vadd.f32 %v166_v62, %v165_v60 }
 0x15c   :  { %v168_v2 = vmul.f32 0.125, %v167_v0 }
 0x15e   :  { %v169_v4 = vsub.f32 %v413_v54, %v168_v2 }
 0x160   :  { %v170_v6 = vmul.f32 %v169_v4, %v169_v4 }
 0x162   :  { %v171_v8 = vrot.slane %v170_v6, 4 }
 0x164   :  { %v172_v10 = vadd.f32 %v171_v8, %v170_v6 }
 0x166   :  { %v173_v12 = vrot.slane %v172_v10, 2 }
 0x168   :  { %v174_v14 = vadd.f32 %v173_v12, %v172_v10 }
 0x16a   :  { %v175_v17 = vrot.slane %v174_v14, 1 }
 0x16c   :  { %v176_v19 = vadd.f32 %v175_v17, %v174_v14 }
 0x16e   :  { %v177_v21 = vmul.f32 0.125, %v176_v19 }
 0x170   :  { %v178_v23 = vadd.f32 1e-05, %v177_v21 }
 0x172   :  { %268 = vrsqrt.f32 %v178_v23  ;;  %vm185_vm5 = vweird.f32 %v178_v23 }
 0x178   :  { %v269_v24 = vpop.eup %268 }
 0x179   :  { %v180_v25 = vmul.f32 %v269_v24, %v178_v23  ;;  %vm186_vm4 = vweird.f32 %v269_v24 }
 0x17a   :  { %vm187_vm6 = vmor %vm185_vm5, %vm186_vm4 }
 0x17b   :  { %v181_v26 = vmul.f32 %v269_v24, %v180_v25 }
 0x17d   :  { %v182_v27 = vmul.f32 0.5, %v181_v26 }
 0x17f   :  { %v183_v28 = vsub.f32 1.5, %v182_v27 }
 0x181   :  { %v184_v30 = vmul.f32 %v269_v24, %v183_v28 }
 0x183   :  { %v188_v31 = vsel %vm187_vm6, %v269_v24, %v184_v30 }
 0x184   :  { %v189_v32 = vmul.f32 %v188_v31, %v161_v29 }
 0x186   :  { %v190_v33 = vmul.f32 %v189_v32, %v168_v2  ;;  %v195_v34 = vperm.slane %v189_v32, 0 }
 0x188   :  { %v192_v35 = vrot.slane %v190_v33, 7  ;;  %v196_v37 = vmul.f32 %v195_v34, %v413_v54 }
 0x18a   :  { %v194_v36 = vsub.f32 %v161_v29, %v192_v35 }
 0x18c   :  { %v197_v38 = vperm.slane %v194_v36, 1 }
 0x18e   :  { %v198_v39 = vadd.f32 %v197_v38, %v196_v37 }
 0x190   :  { %v199_v40 = vmax.f32 %v198_v39, 0.0 }
 0x192   :  { %235 = vmatmul.f32.vlgmr.msra.gmra.mxu2 %v199_v40 }
 0x215   :  { %v236_v42 = vpop.f32.mrf.mxu2 }
 0x216   :  { %v237_v43 = vadd.f32 %v265_v41, %v236_v42 }
 0x218   :  { %239 = vst [vmem:[#allocation8] sm:$0xff] %v237_v43 }
 0x219   :  { %250 = dma.vmem_to_hbm [thread:$0]  %s246_s2, 128, %s248_s30, [#allocation4]  }
 0x21a   :  { %370 = dma.done.wait [#allocation4], 128  }
 0x21b   :  { %371 = vsyncadd [#allocation4], 4294967168 }
 0x21c   :  { %255 = vsyncpa [#allocation3], 1 }
 0x21d   :  { %256 = vsyncpa [#allocation6], 1 }
 0x21e   :  { %257 = vsyncpa [#allocation4], 1 }

</bundles_post_ra>
